<compile_context>
chip_gen: v7x
topology: tpu7x:2x2x1
jax: 0.10.0
libtpu: 0.0.40
codegen_flags: <defaults>
</compile_context>

<pallas_src>
import functools

import jax
import jax.numpy as jnp
from jax import lax
from jax.experimental import pallas as pl
from jax.experimental.pallas import tpu as pltpu

# ----------------------------- hyper-parameters -----------------------------
VARIANCE = (0.1, 0.2)          # cfg['variance']
BBOX_THRESHOLD = 0.6
PRE_ANCHOR_TOPK = 50
SMOOTH_L1_WEIGHT = 0.75
SMOOTH_L1_BETA = 0.11
FOCAL_ALPHA = 0.5
FOCAL_GAMMA = 2.0

LANE_TILE = 512        # lane width of the flattened focal-sum blocks
MAX_ROW_TILE = 512     # sublane rows per focal-sum block (1 MiB blocks at full size)
MAX_ANCHOR_TILE = 2048 # lane tile for the fused IoU kernel (multiple of 128)
TOPK_PAD = 128         # lane padding of the top-k axis in the bag-loss kernel


def _round_up(x, m):
    return ((x + m - 1) // m) * m


# ------------------------------ Pallas kernels -------------------------------
def fused_iou_pallas(t_boxes, box_reg_t, anchors_t):
    """Batched pairwise IoU of GT boxes vs (a) corner-form anchors and
    (b) decoded predicted boxes, with the decode done on-chip.

    t_boxes:   (N, T, 4) corner-form GT boxes
    box_reg_t: (N, 4, A) regression deltas, coordinate-major (anchors lane-dense)
    anchors_t: (4, A)    center-size anchors, coordinate-major
    Returns (obj_iou, mq), each (N, T, A).
    """
    n, t, _ = t_boxes.shape
    a = anchors_t.shape[1]
    tile = min(MAX_ANCHOR_TILE, _round_up(a, 128))
    ap = _round_up(a, tile)
    # padded anchors are zero-area boxes -> IoU exactly 0 (union clamped), sliced off
    box_reg_p = jnp.pad(box_reg_t.astype(jnp.float32), ((0, 0), (0, 0), (0, ap - a)))
    anchors_p = jnp.pad(anchors_t.astype(jnp.float32), ((0, 0), (0, ap - a)))
    v0, v1 = VARIANCE

    def kernel(t_ref, br_ref, an_ref, obj_ref, mq_ref):
        tb = t_ref[0]                                  # (T, 4)
        tx1 = tb[:, 0:1]; ty1 = tb[:, 1:2]
        tx2 = tb[:, 2:3]; ty2 = tb[:, 3:4]
        area_t = (tx2 - tx1) * (ty2 - ty1)             # (T, 1)

        an = an_ref[...]                               # (4, tile)
        acx = an[0:1, :]; acy = an[1:2, :]
        aw = an[2:3, :];  ah = an[3:4, :]

        def iou(bx1, by1, bx2, by2):
            iw = jnp.maximum(jnp.minimum(tx2, bx2) - jnp.maximum(tx1, bx1), 0.0)
            ih = jnp.maximum(jnp.minimum(ty2, by2) - jnp.maximum(ty1, by1), 0.0)
            inter = iw * ih
            area_b = (bx2 - bx1) * (by2 - by1)
            union = jnp.maximum(area_t + area_b - inter, 1e-12)
            return inter * pl.reciprocal(union, approx=True)

        # match-quality matrix: GT boxes vs point_form(anchors)
        mq_ref[0] = iou(acx - 0.5 * aw, acy - 0.5 * ah,
                        acx + 0.5 * aw, acy + 0.5 * ah)

        # decode(box_regression, anchors) on-chip, then point_form, then IoU
        br = br_ref[0]                                 # (4, tile)
        pcx = acx + br[0:1, :] * v0 * aw
        pcy = acy + br[1:2, :] * v0 * ah
        pw = aw * jnp.exp(br[2:3, :] * v1)
        ph = ah * jnp.exp(br[3:4, :] * v1)
        obj_ref[0] = iou(pcx - 0.5 * pw, pcy - 0.5 * ph,
                         pcx + 0.5 * pw, pcy + 0.5 * ph)

    obj, mq = pl.pallas_call(
        kernel,
        out_shape=(jax.ShapeDtypeStruct((n, t, ap), jnp.float32),
                   jax.ShapeDtypeStruct((n, t, ap), jnp.float32)),
        grid=(n, ap // tile),
        in_specs=[
            pl.BlockSpec((1, t, 4), lambda b, j: (b, 0, 0)),
            pl.BlockSpec((1, 4, tile), lambda b, j: (b, 0, j)),
            pl.BlockSpec((4, tile), lambda b, j: (0, j)),
        ],
        out_specs=(
            pl.BlockSpec((1, t, tile), lambda b, j: (b, 0, j)),
            pl.BlockSpec((1, t, tile), lambda b, j: (b, 0, j)),
        ),
        compiler_params=pltpu.CompilerParams(
            dimension_semantics=("parallel", "parallel")),
    )(t_boxes.astype(jnp.float32), box_reg_p, anchors_p)
    return obj[:, :, :a], mq[:, :, :a]


def negative_focal_sum_pallas(cls_logits, box_prob, gamma):
    """sum over (n,a,c) of p**gamma * BCE(p, 0), p = sigmoid(logit) * (1 - box_prob).

    The sigmoid is fused here so cls_prob never makes an HBM round trip.  Each grid
    step reduces a (row_tile, LANE_TILE) block to a lane-dense (1, LANE_TILE) partial
    (unmasked lane-dense store); the tiny (G, LANE_TILE) partial array is summed in
    plain JAX.
    """
    total = cls_logits.size
    lanes = LANE_TILE
    rows = (total + lanes - 1) // lanes
    row_tile = min(MAX_ROW_TILE, _round_up(rows, 8))
    rows_p = _round_up(rows, row_tile)
    pad = rows_p * lanes - total

    lg = jnp.pad(cls_logits.reshape(-1).astype(jnp.float32),
                 (0, pad)).reshape(rows_p, lanes)
    # pad box_prob with 1.0 so padded elements give p = sigmoid(0)*(1-1) = 0 -> zero loss
    bp = jnp.pad(box_prob.reshape(-1).astype(jnp.float32), (0, pad),
                 constant_values=1.0).reshape(rows_p, lanes)
    g = rows_p // row_tile

    def kernel(lg_ref, bp_ref, o_ref):
        p = jax.nn.sigmoid(lg_ref[...]) * (1.0 - bp_ref[...])
        # binary_cross_entropy(p, zeros) with PyTorch's log clamp at -100
        bce = -jnp.maximum(jnp.log1p(-p), -100.0)
        pf = p * p if gamma == 2.0 else p ** gamma
        o_ref[...] = jnp.sum(pf * bce, axis=0, keepdims=True)   # (1, lanes)

    partials = pl.pallas_call(
        kernel,
        out_shape=jax.ShapeDtypeStruct((g, lanes), jnp.float32),
        grid=(g,),
        in_specs=[pl.BlockSpec((row_tile, lanes), lambda i: (i, 0)),
                  pl.BlockSpec((row_tile, lanes), lambda i: (i, 0))],
        out_specs=pl.BlockSpec((1, lanes), lambda i: (i, 0)),
        compiler_params=pltpu.CompilerParams(dimension_semantics=("parallel",)),
    )(lg, bp)
    return jnp.sum(partials)


def positive_bag_loss_pallas(matched_cls_prob, pred_t, tgt_t, k_real, weight, beta):
    """Fused smooth-L1 + exp(-loss) + positive bag loss, batched over images.

    matched_cls_prob: (N, T, Kp) sigmoid(cls_logits) gathered at (matched, label),
                      lane-padded along the top-k axis (padding = 0, masked in-kernel)
    pred_t, tgt_t:    (N, 4, T, Kp) coordinate-major so the top-k axis is lane-dense
    Returns (N, T, 1) per-GT-box bag losses.
    """
    n, t, kp = matched_cls_prob.shape

    def kernel(p_ref, pr_ref, tg_ref, o_ref):
        val = tg_ref[0] - pr_ref[0]                            # (4, T, Kp)
        abs_val = jnp.abs(val)
        sl1 = jnp.where(abs_val < beta, 0.5 / beta * val * val, abs_val - 0.5 * beta)
        reg_loss = weight * jnp.sum(sl1, axis=0)               # (T, Kp): 3 vector adds
        logits = p_ref[0] * jnp.exp(-reg_loss)                 # (T, Kp)
        valid = lax.broadcasted_iota(jnp.int32, (t, kp), 1) < k_real
        w = jnp.where(valid, 1.0 / jnp.maximum(1.0 - logits, 1e-12), 0.0)
        w = w / jnp.sum(w, axis=1, keepdims=True)
        bag_prob = jnp.sum(w * logits, axis=1, keepdims=True)  # (T, 1)
        # binary_cross_entropy(bag_prob, ones) with PyTorch's log clamp at -100
        o_ref[0] = -jnp.maximum(jnp.log(bag_prob), -100.0)

    return pl.pallas_call(
        kernel,
        out_shape=jax.ShapeDtypeStruct((n, t, 1), jnp.float32),
        grid=(n,),
        in_specs=[
            pl.BlockSpec((1, t, kp), lambda b: (b, 0, 0)),
            pl.BlockSpec((1, 4, t, kp), lambda b: (b, 0, 0, 0)),
            pl.BlockSpec((1, 4, t, kp), lambda b: (b, 0, 0, 0)),
        ],
        out_specs=pl.BlockSpec((1, t, 1), lambda b: (b, 0, 0)),
        compiler_params=pltpu.CompilerParams(dimension_semantics=("parallel",)),
    )(matched_cls_prob.astype(jnp.float32),
      pred_t.astype(jnp.float32),
      tgt_t.astype(jnp.float32))


# ------------------------------- forward pass --------------------------------
@functools.partial(jax.jit, static_argnames=("num_classes",))
def free_loss_forward(predictions, targets, *, num_classes):
    box_regression, cls_logits, anchors = predictions   # (N,A,4), (N,A,C), (A,4)
    n, a, c = cls_logits.shape
    assert c == num_classes
    t = targets.shape[1]
    v0, v1 = VARIANCE

    t_boxes = targets[..., :4]                           # (N, T, 4) corner form
    labels = targets[..., 4].astype(jnp.int32)           # (N, T)

    # ---- single fused, batched IoU launch (decode folded in, two outputs) ----
    box_reg_t = jnp.transpose(box_regression, (0, 2, 1)) # (N, 4, A) anchors lane-dense
    anchors_t = jnp.transpose(anchors)                   # (4, A)
    obj_iou, mq = fused_iou_pallas(t_boxes, box_reg_t, anchors_t)   # (N,T,A) each

    # ---- box_prob branch (no-grad in the reference; forward values identical) ----
    t1 = BBOX_THRESHOLD
    t2 = jnp.maximum(jnp.max(obj_iou, axis=2, keepdims=True), t1 + 1e-12)
    obj_box_prob = jnp.clip((obj_iou - t1) / (t2 - t1), 0.0, 1.0)    # (N, T, A)

    # exact dense equivalent of the torch.sparse scatter/max construction, without
    # materializing the (T, A, C) one-hot intermediate: scatter-max over the GT axis.
    def _image_box_prob(obp_i, labels_i):
        init = jnp.zeros((num_classes, a), obp_i.dtype)
        return jnp.transpose(init.at[labels_i].max(obp_i))           # (A, C)
    box_prob = jax.vmap(_image_box_prob)(obj_box_prob, labels)       # (N, A, C)

    # ---- positive bag loss branch ----
    _, matched = lax.top_k(mq, PRE_ANCHOR_TOPK)          # (N, T, K)

    def _gather_image(logits_i, box_reg_i, matched_i, labels_i):
        g = logits_i[matched_i]                                           # (T, K, C)
        m_logit = jnp.take_along_axis(g, labels_i[:, None, None], axis=2)[..., 0]
        return m_logit, box_reg_i[matched_i]                              # (T,K),(T,K,4)

    matched_logits, pred = jax.vmap(_gather_image)(
        cls_logits, box_regression, matched, labels)
    matched_cls_prob = jax.nn.sigmoid(matched_logits)    # tiny T*K gather + sigmoid

    matched_anchors = anchors[matched]                   # (N, T, K, 4) center form
    tb = t_boxes[:, :, None, :]                          # broadcast over K
    g_cxcy = ((tb[..., :2] + tb[..., 2:]) / 2.0 - matched_anchors[..., :2]) / (
        v0 * matched_anchors[..., 2:])
    g_wh = jnp.log((tb[..., 2:] - tb[..., :2]) / matched_anchors[..., 2:]) / v1
    matched_targets = jnp.concatenate([g_cxcy, g_wh], axis=-1)        # (N, T, K, 4)

    # repack coordinate-major and lane-pad the top-k axis for the bag-loss kernel
    kp = _round_up(PRE_ANCHOR_TOPK, TOPK_PAD)
    pad4 = ((0, 0), (0, 0), (0, 0), (0, kp - PRE_ANCHOR_TOPK))
    pred_t = jnp.pad(jnp.transpose(pred, (0, 3, 1, 2)), pad4)             # (N,4,T,Kp)
    tgt_t = jnp.pad(jnp.transpose(matched_targets, (0, 3, 1, 2)), pad4)   # (N,4,T,Kp)
    mcp_p = jnp.pad(matched_cls_prob,
                    ((0, 0), (0, 0), (0, kp - PRE_ANCHOR_TOPK)))          # (N,T,Kp)

    pos_loss = positive_bag_loss_pallas(
        mcp_p, pred_t, tgt_t, PRE_ANCHOR_TOPK, SMOOTH_L1_WEIGHT, SMOOTH_L1_BETA)
    positive_numels = n * t
    positive_loss = jnp.sum(pos_loss) / max(1, positive_numels)

    # ---- negative focal loss: sigmoid fused into the reduction kernel ----
    neg_sum = negative_focal_sum_pallas(cls_logits, box_prob, FOCAL_GAMMA)
    negative_loss = neg_sum / max(1, positive_numels * PRE_ANCHOR_TOPK)

    loss_p = positive_loss * FOCAL_ALPHA
    loss_n = negative_loss * (1.0 - FOCAL_ALPHA)
    return loss_p, loss_n


# ------------------------------------ main ------------------------------------
if __name__ == "__main__":
    key = jax.random.PRNGKey(0)
    k1, k2, k3, k4, k5, k6, k7 = jax.random.split(key, 7)

    N, A, C, T = 2, 256, 8, 4   # batch, anchors, num_classes, GT boxes per image

    # anchors in center-size form, normalized coords
    a_cxcy = jax.random.uniform(k1, (A, 2), minval=0.2, maxval=0.8)
    a_wh = jax.random.uniform(k2, (A, 2), minval=0.05, maxval=0.3)
    anchors = jnp.concatenate([a_cxcy, a_wh], axis=1).astype(jnp.float32)

    # ground-truth targets: corner-form boxes + class label, fixed T per image
    t_c = jax.random.uniform(k3, (N, T, 2), minval=0.3, maxval=0.7)
    t_wh = jax.random.uniform(k4, (N, T, 2), minval=0.1, maxval=0.3)
    t_boxes = jnp.concatenate([t_c - t_wh / 2.0, t_c + t_wh / 2.0], axis=-1)
    t_labels = jax.random.randint(k5, (N, T), 0, C).astype(jnp.float32)
    targets = jnp.concatenate([t_boxes, t_labels[..., None]], axis=-1).astype(jnp.float32)

    # network predictions
    box_regression = (0.1 * jax.random.normal(k6, (N, A, 4))).astype(jnp.float32)
    cls_logits = jax.random.normal(k7, (N, A, C)).astype(jnp.float32)

    loss_p, loss_n = free_loss_forward(
        (box_regression, cls_logits, anchors), targets, num_classes=C
    )
    loss_p, loss_n = jax.block_until_ready((loss_p, loss_n))

    assert bool(jnp.isfinite(loss_p)) and bool(jnp.isfinite(loss_n)), (loss_p, loss_n)
    print("KERNEL_OK")
</pallas_src>

<mosaic_0001>
module attributes {stable_mosaic.version = 11 : i64} {
  func.func @kernel(%arg0: i32, %arg1: i32, %arg2: memref<1x4x4xf32, #tpu.memory_space<vmem>>, %arg3: memref<1x4x256xf32, #tpu.memory_space<vmem>>, %arg4: memref<4x256xf32, #tpu.memory_space<vmem>>, %arg5: memref<1x4x256xf32, #tpu.memory_space<vmem>>, %arg6: memref<1x4x256xf32, #tpu.memory_space<vmem>>) attributes {dimension_semantics = [#tpu.dimension_semantics<parallel>, #tpu.dimension_semantics<parallel>], iteration_bounds = array<i64: 2, 1>, scalar_prefetch = 0 : i64, scratch_operands = 0 : i64, tpu.core_type = #tpu.core_type<tc>, window_params = [{transform_indices = @transform_0, window_bounds = array<i64: 1, 4, 4>}, {transform_indices = @transform_1, window_bounds = array<i64: 1, 4, 256>}, {transform_indices = @transform_2, window_bounds = array<i64: 4, 256>}, {transform_indices = @transform_3, window_bounds = array<i64: 1, 4, 256>}, {transform_indices = @transform_4, window_bounds = array<i64: 1, 4, 256>}]} {
    %c0 = arith.constant 0 : index
    %c0_0 = arith.constant 0 : index
    %c0_1 = arith.constant 0 : index
    %0 = vector.load %arg2[%c0, %c0_0, %c0_1] : memref<1x4x4xf32, #tpu.memory_space<vmem>>, vector<1x4x4xf32>
    %1 = vector.shape_cast %0 : vector<1x4x4xf32> to vector<4x4xf32>
    %2 = vector.extract_strided_slice %1 {offsets = [0, 0], sizes = [4, 1], strides = [1, 1]} : vector<4x4xf32> to vector<4x1xf32>
    %3 = vector.extract_strided_slice %1 {offsets = [0, 1], sizes = [4, 1], strides = [1, 1]} : vector<4x4xf32> to vector<4x1xf32>
    %4 = vector.extract_strided_slice %1 {offsets = [0, 2], sizes = [4, 1], strides = [1, 1]} : vector<4x4xf32> to vector<4x1xf32>
    %5 = vector.extract_strided_slice %1 {offsets = [0, 3], sizes = [4, 1], strides = [1, 1]} : vector<4x4xf32> to vector<4x1xf32>
    %6 = arith.subf %4, %2 : vector<4x1xf32>
    %7 = arith.subf %5, %3 : vector<4x1xf32>
    %8 = arith.mulf %6, %7 : vector<4x1xf32>
    %c0_2 = arith.constant 0 : index
    %c0_3 = arith.constant 0 : index
    %9 = vector.load %arg4[%c0_2, %c0_3] : memref<4x256xf32, #tpu.memory_space<vmem>>, vector<4x256xf32>
    %10 = vector.extract_strided_slice %9 {offsets = [0, 0], sizes = [1, 256], strides = [1, 1]} : vector<4x256xf32> to vector<1x256xf32>
    %11 = vector.extract_strided_slice %9 {offsets = [1, 0], sizes = [1, 256], strides = [1, 1]} : vector<4x256xf32> to vector<1x256xf32>
    %12 = vector.extract_strided_slice %9 {offsets = [2, 0], sizes = [1, 256], strides = [1, 1]} : vector<4x256xf32> to vector<1x256xf32>
    %13 = vector.extract_strided_slice %9 {offsets = [3, 0], sizes = [1, 256], strides = [1, 1]} : vector<4x256xf32> to vector<1x256xf32>
    %cst = arith.constant 5.000000e-01 : f32
    %14 = vector.broadcast %cst : f32 to vector<1x256xf32>
    %15 = arith.mulf %14, %12 : vector<1x256xf32>
    %16 = arith.subf %10, %15 : vector<1x256xf32>
    %cst_4 = arith.constant 5.000000e-01 : f32
    %17 = vector.broadcast %cst_4 : f32 to vector<1x256xf32>
    %18 = arith.mulf %17, %13 : vector<1x256xf32>
    %19 = arith.subf %11, %18 : vector<1x256xf32>
    %cst_5 = arith.constant 5.000000e-01 : f32
    %20 = vector.broadcast %cst_5 : f32 to vector<1x256xf32>
    %21 = arith.mulf %20, %12 : vector<1x256xf32>
    %22 = arith.addf %10, %21 : vector<1x256xf32>
    %cst_6 = arith.constant 5.000000e-01 : f32
    %23 = vector.broadcast %cst_6 : f32 to vector<1x256xf32>
    %24 = arith.mulf %23, %13 : vector<1x256xf32>
    %25 = arith.addf %11, %24 : vector<1x256xf32>
    %26 = vector.broadcast %4 : vector<4x1xf32> to vector<4x256xf32>
    %27 = vector.broadcast %22 : vector<1x256xf32> to vector<4x256xf32>
    %28 = arith.minimumf %26, %27 : vector<4x256xf32>
    %29 = vector.broadcast %2 : vector<4x1xf32> to vector<4x256xf32>
    %30 = vector.broadcast %16 : vector<1x256xf32> to vector<4x256xf32>
    %31 = arith.maximumf %29, %30 : vector<4x256xf32>
    %32 = arith.subf %28, %31 : vector<4x256xf32>
    %cst_7 = arith.constant 0.000000e+00 : f32
    %33 = vector.broadcast %cst_7 : f32 to vector<4x256xf32>
    %34 = arith.maximumf %32, %33 : vector<4x256xf32>
    %35 = vector.broadcast %5 : vector<4x1xf32> to vector<4x256xf32>
    %36 = vector.broadcast %25 : vector<1x256xf32> to vector<4x256xf32>
    %37 = arith.minimumf %35, %36 : vector<4x256xf32>
    %38 = vector.broadcast %3 : vector<4x1xf32> to vector<4x256xf32>
    %39 = vector.broadcast %19 : vector<1x256xf32> to vector<4x256xf32>
    %40 = arith.maximumf %38, %39 : vector<4x256xf32>
    %41 = arith.subf %37, %40 : vector<4x256xf32>
    %cst_8 = arith.constant 0.000000e+00 : f32
    %42 = vector.broadcast %cst_8 : f32 to vector<4x256xf32>
    %43 = arith.maximumf %41, %42 : vector<4x256xf32>
    %44 = arith.mulf %34, %43 : vector<4x256xf32>
    %45 = arith.subf %22, %16 : vector<1x256xf32>
    %46 = arith.subf %25, %19 : vector<1x256xf32>
    %47 = arith.mulf %45, %46 : vector<1x256xf32>
    %48 = vector.broadcast %8 : vector<4x1xf32> to vector<4x256xf32>
    %49 = vector.broadcast %47 : vector<1x256xf32> to vector<4x256xf32>
    %50 = arith.addf %48, %49 : vector<4x256xf32>
    %51 = arith.subf %50, %44 : vector<4x256xf32>
    %cst_9 = arith.constant 9.99999996E-13 : f32
    %52 = vector.broadcast %cst_9 : f32 to vector<4x256xf32>
    %53 = arith.maximumf %51, %52 : vector<4x256xf32>
    %54 = tpu.reciprocal %53 {approx = true} : vector<4x256xf32> -> vector<4x256xf32>
    %55 = arith.mulf %44, %54 : vector<4x256xf32>
    %c0_10 = arith.constant 0 : index
    %c0_11 = arith.constant 0 : index
    %c0_12 = arith.constant 0 : index
    %56 = vector.load %arg6[%c0_10, %c0_11, %c0_12] : memref<1x4x256xf32, #tpu.memory_space<vmem>>, vector<1x4x256xf32>
    %57 = vector.shape_cast %56 : vector<1x4x256xf32> to vector<4x256xf32>
    %58 = vector.shape_cast %55 : vector<4x256xf32> to vector<1x4x256xf32>
    tpu.vector_store %arg6[%c0_10, %c0_11, %c0_12], %58 {strides = array<i32>} : memref<1x4x256xf32, #tpu.memory_space<vmem>>, vector<1x4x256xf32>,
    %c0_13 = arith.constant 0 : index
    %c0_14 = arith.constant 0 : index
    %c0_15 = arith.constant 0 : index
    %59 = vector.load %arg3[%c0_13, %c0_14, %c0_15] : memref<1x4x256xf32, #tpu.memory_space<vmem>>, vector<1x4x256xf32>
    %60 = vector.shape_cast %59 : vector<1x4x256xf32> to vector<4x256xf32>
    %61 = vector.extract_strided_slice %60 {offsets = [0, 0], sizes = [1, 256], strides = [1, 1]} : vector<4x256xf32> to vector<1x256xf32>
    %cst_16 = arith.constant 1.000000e-01 : f32
    %62 = vector.broadcast %cst_16 : f32 to vector<1x256xf32>
    %63 = arith.mulf %61, %62 : vector<1x256xf32>
    %64 = arith.mulf %63, %12 : vector<1x256xf32>
    %65 = arith.addf %10, %64 : vector<1x256xf32>
    %66 = vector.extract_strided_slice %60 {offsets = [1, 0], sizes = [1, 256], strides = [1, 1]} : vector<4x256xf32> to vector<1x256xf32>
    %cst_17 = arith.constant 1.000000e-01 : f32
    %67 = vector.broadcast %cst_17 : f32 to vector<1x256xf32>
    %68 = arith.mulf %66, %67 : vector<1x256xf32>
    %69 = arith.mulf %68, %13 : vector<1x256xf32>
    %70 = arith.addf %11, %69 : vector<1x256xf32>
    %71 = vector.extract_strided_slice %60 {offsets = [2, 0], sizes = [1, 256], strides = [1, 1]} : vector<4x256xf32> to vector<1x256xf32>
    %cst_18 = arith.constant 2.000000e-01 : f32
    %72 = vector.broadcast %cst_18 : f32 to vector<1x256xf32>
    %73 = arith.mulf %71, %72 : vector<1x256xf32>
    %74 = math.exp %73 : vector<1x256xf32>
    %75 = arith.mulf %12, %74 : vector<1x256xf32>
    %76 = vector.extract_strided_slice %60 {offsets = [3, 0], sizes = [1, 256], strides = [1, 1]} : vector<4x256xf32> to vector<1x256xf32>
    %cst_19 = arith.constant 2.000000e-01 : f32
    %77 = vector.broadcast %cst_19 : f32 to vector<1x256xf32>
    %78 = arith.mulf %76, %77 : vector<1x256xf32>
    %79 = math.exp %78 : vector<1x256xf32>
    %80 = arith.mulf %13, %79 : vector<1x256xf32>
    %cst_20 = arith.constant 5.000000e-01 : f32
    %81 = vector.broadcast %cst_20 : f32 to vector<1x256xf32>
    %82 = arith.mulf %81, %75 : vector<1x256xf32>
    %83 = arith.subf %65, %82 : vector<1x256xf32>
    %cst_21 = arith.constant 5.000000e-01 : f32
    %84 = vector.broadcast %cst_21 : f32 to vector<1x256xf32>
    %85 = arith.mulf %84, %80 : vector<1x256xf32>
    %86 = arith.subf %70, %85 : vector<1x256xf32>
    %cst_22 = arith.constant 5.000000e-01 : f32
    %87 = vector.broadcast %cst_22 : f32 to vector<1x256xf32>
    %88 = arith.mulf %87, %75 : vector<1x256xf32>
    %89 = arith.addf %65, %88 : vector<1x256xf32>
    %cst_23 = arith.constant 5.000000e-01 : f32
    %90 = vector.broadcast %cst_23 : f32 to vector<1x256xf32>
    %91 = arith.mulf %90, %80 : vector<1x256xf32>
    %92 = arith.addf %70, %91 : vector<1x256xf32>
    %93 = vector.broadcast %4 : vector<4x1xf32> to vector<4x256xf32>
    %94 = vector.broadcast %89 : vector<1x256xf32> to vector<4x256xf32>
    %95 = arith.minimumf %93, %94 : vector<4x256xf32>
    %96 = vector.broadcast %2 : vector<4x1xf32> to vector<4x256xf32>
    %97 = vector.broadcast %83 : vector<1x256xf32> to vector<4x256xf32>
    %98 = arith.maximumf %96, %97 : vector<4x256xf32>
    %99 = arith.subf %95, %98 : vector<4x256xf32>
    %cst_24 = arith.constant 0.000000e+00 : f32
    %100 = vector.broadcast %cst_24 : f32 to vector<4x256xf32>
    %101 = arith.maximumf %99, %100 : vector<4x256xf32>
    %102 = vector.broadcast %5 : vector<4x1xf32> to vector<4x256xf32>
    %103 = vector.broadcast %92 : vector<1x256xf32> to vector<4x256xf32>
    %104 = arith.minimumf %102, %103 : vector<4x256xf32>
    %105 = vector.broadcast %3 : vector<4x1xf32> to vector<4x256xf32>
    %106 = vector.broadcast %86 : vector<1x256xf32> to vector<4x256xf32>
    %107 = arith.maximumf %105, %106 : vector<4x256xf32>
    %108 = arith.subf %104, %107 : vector<4x256xf32>
    %cst_25 = arith.constant 0.000000e+00 : f32
    %109 = vector.broadcast %cst_25 : f32 to vector<4x256xf32>
    %110 = arith.maximumf %108, %109 : vector<4x256xf32>
    %111 = arith.mulf %101, %110 : vector<4x256xf32>
    %112 = arith.subf %89, %83 : vector<1x256xf32>
    %113 = arith.subf %92, %86 : vector<1x256xf32>
    %114 = arith.mulf %112, %113 : vector<1x256xf32>
    %115 = vector.broadcast %8 : vector<4x1xf32> to vector<4x256xf32>
    %116 = vector.broadcast %114 : vector<1x256xf32> to vector<4x256xf32>
    %117 = arith.addf %115, %116 : vector<4x256xf32>
    %118 = arith.subf %117, %111 : vector<4x256xf32>
    %cst_26 = arith.constant 9.99999996E-13 : f32
    %119 = vector.broadcast %cst_26 : f32 to vector<4x256xf32>
    %120 = arith.maximumf %118, %119 : vector<4x256xf32>
    %121 = tpu.reciprocal %120 {approx = true} : vector<4x256xf32> -> vector<4x256xf32>
    %122 = arith.mulf %111, %121 : vector<4x256xf32>
    %c0_27 = arith.constant 0 : index
    %c0_28 = arith.constant 0 : index
    %c0_29 = arith.constant 0 : index
    %123 = vector.load %arg5[%c0_27, %c0_28, %c0_29] : memref<1x4x256xf32, #tpu.memory_space<vmem>>, vector<1x4x256xf32>
    %124 = vector.shape_cast %123 : vector<1x4x256xf32> to vector<4x256xf32>
    %125 = vector.shape_cast %122 : vector<4x256xf32> to vector<1x4x256xf32>
    tpu.vector_store %arg5[%c0_27, %c0_28, %c0_29], %125 {strides = array<i32>} : memref<1x4x256xf32, #tpu.memory_space<vmem>>, vector<1x4x256xf32>,
    return
  }
  func.func @transform_0(%arg0: i32, %arg1: i32) -> (i32, i32, i32) {
    %c0_i32 = arith.constant 0 : i32
    %c0_i32_0 = arith.constant 0 : i32
    %c0_i32_1 = arith.constant 0 : i32
    return %arg0, %c0_i32, %c0_i32_0 : i32, i32, i32
  }
  func.func @transform_1(%arg0: i32, %arg1: i32) -> (i32, i32, i32) {
    %c0_i32 = arith.constant 0 : i32
    %c0_i32_0 = arith.constant 0 : i32
    return %arg0, %c0_i32, %arg1 : i32, i32, i32
  }
  func.func @transform_2(%arg0: i32, %arg1: i32) -> (i32, i32) {
    %c0_i32 = arith.constant 0 : i32
    %c0_i32_0 = arith.constant 0 : i32
    return %c0_i32, %arg1 : i32, i32
  }
  func.func @transform_3(%arg0: i32, %arg1: i32) -> (i32, i32, i32) {
    %c0_i32 = arith.constant 0 : i32
    %c0_i32_0 = arith.constant 0 : i32
    return %arg0, %c0_i32, %arg1 : i32, i32, i32
  }
  func.func @transform_4(%arg0: i32, %arg1: i32) -> (i32, i32, i32) {
    %c0_i32 = arith.constant 0 : i32
    %c0_i32_0 = arith.constant 0 : i32
    return %arg0, %c0_i32, %arg1 : i32, i32, i32
  }
}

module attributes {stable_mosaic.version = 11 : i64} {
  func.func @kernel(%arg0: i32, %arg1: memref<8x512xf32, #tpu.memory_space<vmem>>, %arg2: memref<8x512xf32, #tpu.memory_space<vmem>>, %arg3: memref<1x512xf32, #tpu.memory_space<vmem>>) attributes {dimension_semantics = [#tpu.dimension_semantics<parallel>], iteration_bounds = array<i64: 1>, scalar_prefetch = 0 : i64, scratch_operands = 0 : i64, tpu.core_type = #tpu.core_type<tc>, window_params = [{transform_indices = @transform_0, window_bounds = array<i64: 8, 512>}, {transform_indices = @transform_1, window_bounds = array<i64: 8, 512>}, {transform_indices = @transform_2, window_bounds = array<i64: 1, 512>}]} {
    %c0 = arith.constant 0 : index
    %c0_0 = arith.constant 0 : index
    %0 = vector.load %arg1[%c0, %c0_0] : memref<8x512xf32, #tpu.memory_space<vmem>>, vector<8x512xf32>
    %1 = arith.negf %0 : vector<8x512xf32>
    %2 = math.exp %1 : vector<8x512xf32>
    %cst = arith.constant 1.000000e+00 : f32
    %3 = vector.broadcast %cst : f32 to vector<8x512xf32>
    %4 = arith.addf %3, %2 : vector<8x512xf32>
    %5 = arith.divf %3, %4 : vector<8x512xf32>
    %c0_1 = arith.constant 0 : index
    %c0_2 = arith.constant 0 : index
    %6 = vector.load %arg2[%c0_1, %c0_2] : memref<8x512xf32, #tpu.memory_space<vmem>>, vector<8x512xf32>
    %cst_3 = arith.constant 1.000000e+00 : f32
    %7 = vector.broadcast %cst_3 : f32 to vector<8x512xf32>
    %8 = arith.subf %7, %6 : vector<8x512xf32>
    %9 = arith.mulf %5, %8 : vector<8x512xf32>
    %cst_4 = arith.constant 0.000000e+00 : f32
    %10 = vector.broadcast %cst_4 : f32 to vector<8x512xf32>
    %11 = arith.subf %10, %9 : vector<8x512xf32>
    %12 = math.log1p %11 : vector<8x512xf32>
    %cst_5 = arith.constant -1.000000e+02 : f32
    %13 = vector.broadcast %cst_5 : f32 to vector<8x512xf32>
    %14 = arith.maximumf %12, %13 : vector<8x512xf32>
    %cst_6 = arith.constant 0.000000e+00 : f32
    %15 = vector.broadcast %cst_6 : f32 to vector<8x512xf32>
    %16 = arith.subf %15, %14 : vector<8x512xf32>
    %17 = arith.mulf %9, %9 : vector<8x512xf32>
    %18 = arith.mulf %17, %16 : vector<8x512xf32>
    %cst_7 = arith.constant dense<0.000000e+00> : vector<512xf32>
    %19 = vector.multi_reduction <add>, %18, %cst_7 [0] : vector<8x512xf32> to vector<512xf32>
    %20 = vector.shape_cast %19 : vector<512xf32> to vector<1x512xf32>
    %c0_8 = arith.constant 0 : index
    %c0_9 = arith.constant 0 : index
    %21 = vector.load %arg3[%c0_8, %c0_9] : memref<1x512xf32, #tpu.memory_space<vmem>>, vector<1x512xf32>
    tpu.vector_store %arg3[%c0_8, %c0_9], %20 {strides = array<i32>} : memref<1x512xf32, #tpu.memory_space<vmem>>, vector<1x512xf32>,
    return
  }
  func.func @transform_0(%arg0: i32) -> (i32, i32) {
    %c0_i32 = arith.constant 0 : i32
    %c0_i32_0 = arith.constant 0 : i32
    return %arg0, %c0_i32 : i32, i32
  }
  func.func @transform_1(%arg0: i32) -> (i32, i32) {
    %c0_i32 = arith.constant 0 : i32
    %c0_i32_0 = arith.constant 0 : i32
    return %arg0, %c0_i32 : i32, i32
  }
  func.func @transform_2(%arg0: i32) -> (i32, i32) {
    %c0_i32 = arith.constant 0 : i32
    %c0_i32_0 = arith.constant 0 : i32
    return %arg0, %c0_i32 : i32, i32
  }
}

module attributes {stable_mosaic.version = 11 : i64} {
  func.func @kernel(%arg0: i32, %arg1: memref<1x4x128xf32, #tpu.memory_space<vmem>>, %arg2: memref<1x4x4x128xf32, #tpu.memory_space<vmem>>, %arg3: memref<1x4x4x128xf32, #tpu.memory_space<vmem>>, %arg4: memref<1x4x1xf32, #tpu.memory_space<vmem>>) attributes {dimension_semantics = [#tpu.dimension_semantics<parallel>], iteration_bounds = array<i64: 2>, scalar_prefetch = 0 : i64, scratch_operands = 0 : i64, tpu.core_type = #tpu.core_type<tc>, window_params = [{transform_indices = @transform_0, window_bounds = array<i64: 1, 4, 128>}, {transform_indices = @transform_1, window_bounds = array<i64: 1, 4, 4, 128>}, {transform_indices = @transform_2, window_bounds = array<i64: 1, 4, 4, 128>}, {transform_indices = @transform_3, window_bounds = array<i64: 1, 4, 1>}]} {
    %c0 = arith.constant 0 : index
    %c0_0 = arith.constant 0 : index
    %c0_1 = arith.constant 0 : index
    %c0_2 = arith.constant 0 : index
    %0 = vector.load %arg3[%c0, %c0_0, %c0_1, %c0_2] : memref<1x4x4x128xf32, #tpu.memory_space<vmem>>, vector<1x4x4x128xf32>
    %1 = vector.shape_cast %0 : vector<1x4x4x128xf32> to vector<4x4x128xf32>
    %c0_3 = arith.constant 0 : index
    %c0_4 = arith.constant 0 : index
    %c0_5 = arith.constant 0 : index
    %c0_6 = arith.constant 0 : index
    %2 = vector.load %arg2[%c0_3, %c0_4, %c0_5, %c0_6] : memref<1x4x4x128xf32, #tpu.memory_space<vmem>>, vector<1x4x4x128xf32>
    %3 = vector.shape_cast %2 : vector<1x4x4x128xf32> to vector<4x4x128xf32>
    %4 = arith.subf %1, %3 : vector<4x4x128xf32>
    %5 = math.absf %4 : vector<4x4x128xf32>
    %cst = arith.constant 1.100000e-01 : f32
    %6 = vector.broadcast %cst : f32 to vector<4x4x128xf32>
    %7 = arith.cmpf olt, %5, %6 : vector<4x4x128xf32>
    %cst_7 = arith.constant 4.5454545 : f32
    %8 = vector.broadcast %cst_7 : f32 to vector<4x4x128xf32>
    %9 = arith.mulf %8, %4 : vector<4x4x128xf32>
    %10 = arith.mulf %9, %4 : vector<4x4x128xf32>
    %cst_8 = arith.constant 5.500000e-02 : f32
    %11 = vector.broadcast %cst_8 : f32 to vector<4x4x128xf32>
    %12 = arith.subf %5, %11 : vector<4x4x128xf32>
    %13 = arith.select %7, %10, %12 : vector<4x4x128xi1>, vector<4x4x128xf32>
    %cst_9 = arith.constant dense<0.000000e+00> : vector<4x128xf32>
    %14 = vector.multi_reduction <add>, %13, %cst_9 [0] : vector<4x4x128xf32> to vector<4x128xf32>
    %cst_10 = arith.constant 7.500000e-01 : f32
    %15 = vector.broadcast %cst_10 : f32 to vector<4x128xf32>
    %16 = arith.mulf %15, %14 : vector<4x128xf32>
    %c0_11 = arith.constant 0 : index
    %c0_12 = arith.constant 0 : index
    %c0_13 = arith.constant 0 : index
    %17 = vector.load %arg1[%c0_11, %c0_12, %c0_13] : memref<1x4x128xf32, #tpu.memory_space<vmem>>, vector<1x4x128xf32>
    %18 = vector.shape_cast %17 : vector<1x4x128xf32> to vector<4x128xf32>
    %cst_14 = arith.constant 0.000000e+00 : f32
    %19 = vector.broadcast %cst_14 : f32 to vector<4x128xf32>
    %20 = arith.subf %19, %16 : vector<4x128xf32>
    %21 = math.exp %20 : vector<4x128xf32>
    %22 = arith.mulf %18, %21 : vector<4x128xf32>
    %23 = tpu.iota {dimensions = array<i32: 1>} : vector<4x128xi32>
    %c50_i32 = arith.constant 50 : i32
    %24 = vector.broadcast %c50_i32 : i32 to vector<4x128xi32>
    %25 = arith.cmpi slt, %23, %24 : vector<4x128xi32>
    %cst_15 = arith.constant 1.000000e+00 : f32
    %26 = vector.broadcast %cst_15 : f32 to vector<4x128xf32>
    %27 = arith.subf %26, %22 : vector<4x128xf32>
    %cst_16 = arith.constant 9.99999996E-13 : f32
    %28 = vector.broadcast %cst_16 : f32 to vector<4x128xf32>
    %29 = arith.maximumf %27, %28 : vector<4x128xf32>
    %cst_17 = arith.constant 1.000000e+00 : f32
    %30 = vector.broadcast %cst_17 : f32 to vector<4x128xf32>
    %31 = arith.divf %30, %29 : vector<4x128xf32>
    %cst_18 = arith.constant 0.000000e+00 : f32
    %32 = vector.broadcast %cst_18 : f32 to vector<4x128xf32>
    %33 = arith.select %25, %31, %32 : vector<4x128xi1>, vector<4x128xf32>
    %cst_19 = arith.constant dense<0.000000e+00> : vector<4xf32>
    %34 = vector.multi_reduction <add>, %33, %cst_19 [1] : vector<4x128xf32> to vector<4xf32>
    %35 = vector.shape_cast %34 : vector<4xf32> to vector<4x1xf32>
    %36 = vector.broadcast %35 : vector<4x1xf32> to vector<4x128xf32>
    %37 = arith.divf %33, %36 : vector<4x128xf32>
    %38 = arith.mulf %37, %22 : vector<4x128xf32>
    %cst_20 = arith.constant dense<0.000000e+00> : vector<4xf32>
    %39 = vector.multi_reduction <add>, %38, %cst_20 [1] : vector<4x128xf32> to vector<4xf32>
    %40 = vector.shape_cast %39 : vector<4xf32> to vector<4x1xf32>
    %41 = math.log %40 : vector<4x1xf32>
    %cst_21 = arith.constant -1.000000e+02 : f32
    %42 = vector.broadcast %cst_21 : f32 to vector<4x1xf32>
    %43 = arith.maximumf %41, %42 : vector<4x1xf32>
    %cst_22 = arith.constant 0.000000e+00 : f32
    %44 = vector.broadcast %cst_22 : f32 to vector<4x1xf32>
    %45 = arith.subf %44, %43 : vector<4x1xf32>
    %c0_23 = arith.constant 0 : index
    %c0_24 = arith.constant 0 : index
    %c0_25 = arith.constant 0 : index
    %46 = vector.load %arg4[%c0_23, %c0_24, %c0_25] : memref<1x4x1xf32, #tpu.memory_space<vmem>>, vector<1x4x1xf32>
    %47 = vector.shape_cast %46 : vector<1x4x1xf32> to vector<4x1xf32>
    %48 = vector.shape_cast %45 : vector<4x1xf32> to vector<1x4x1xf32>
    tpu.vector_store %arg4[%c0_23, %c0_24, %c0_25], %48 {strides = array<i32>} : memref<1x4x1xf32, #tpu.memory_space<vmem>>, vector<1x4x1xf32>,
    return
  }
  func.func @transform_0(%arg0: i32) -> (i32, i32, i32) {
    %c0_i32 = arith.constant 0 : i32
    %c0_i32_0 = arith.constant 0 : i32
    %c0_i32_1 = arith.constant 0 : i32
    return %arg0, %c0_i32, %c0_i32_0 : i32, i32, i32
  }
  func.func @transform_1(%arg0: i32) -> (i32, i32, i32, i32) {
    %c0_i32 = arith.constant 0 : i32
    %c0_i32_0 = arith.constant 0 : i32
    %c0_i32_1 = arith.constant 0 : i32
    %c0_i32_2 = arith.constant 0 : i32
    return %arg0, %c0_i32, %c0_i32_0, %c0_i32_1 : i32, i32, i32, i32
  }
  func.func @transform_2(%arg0: i32) -> (i32, i32, i32, i32) {
    %c0_i32 = arith.constant 0 : i32
    %c0_i32_0 = arith.constant 0 : i32
    %c0_i32_1 = arith.constant 0 : i32
    %c0_i32_2 = arith.constant 0 : i32
    return %arg0, %c0_i32, %c0_i32_0, %c0_i32_1 : i32, i32, i32, i32
  }
  func.func @transform_3(%arg0: i32) -> (i32, i32, i32) {
    %c0_i32 = arith.constant 0 : i32
    %c0_i32_0 = arith.constant 0 : i32
    %c0_i32_1 = arith.constant 0 : i32
    return %arg0, %c0_i32, %c0_i32_0 : i32, i32, i32
  }
}

</mosaic_0001>

<bundles_post_ra>
// kernel: free_loss_forward.3
= control target key start
LH: loop header
LB: loop body
LE: loop exit
PB: predicated region body
PF: predicated region fallthrough
CT: control target
= control target key end

     0   :  { %s909_s15 = smov 0   ;;  %s911_s16 = smov 0   ;;  %s990_s0 = inlined_call_operand.vmem [shape: f32[2,4,4], index: 0, kind: input, shape index: {}]   ;;  %s991_s1 = inlined_call_operand.vmem [shape: f32[2,4,256], index: 1, kind: input, shape index: {}]   ;;  %s992_s2 = inlined_call_operand.vmem [shape: f32[4,256], index: 2, kind: input, shape index: {}]   ;;  %s993_s3 = inlined_call_operand.vmem [shape: f32[2,4,256], index: 3, kind: output, shape index: {0}]   ;;  %s994_s4 = inlined_call_operand.vmem [shape: f32[2,4,256], index: 4, kind: output, shape index: {1}]  }
   0x1   :  { %s913_s17 = smov 0  }
   0x2 LB: > { %s27_s18 = sadd.s32 1, %s872_s16  ;;  %p792_p0 = scmp.ge.s32.totalorder %s876_s17, 1  ;;  %s876_s17 = sphi %s913_s17, %s15_s17   ;;  %s872_s16 = sphi %s911_s16, %s996_s16   ;;  %s868_s15 = sphi %s909_s15, %s995_s15  }
   0x3   : > { %p29_p1 = scmp.ge.s32.totalorder %s27_s18, 2  ;;  %p208_p2 = scmp.lt.s32.totalorder %s876_s17, 3 }
   0x5   : > { %s998_s18 = smov (%p29_p1, %s27_s18), 0  ;;  %p209_p3 = pnand %p792_p0, %p208_p2 }
   0x6   : > { %p260_p4 = scmp.lt.s32.totalorder (!%p209_p3), %s868_s15, 1  ;;  %v878_v0 = vmov (!%p209_p3), 2   ;;  %v879_v1 = vmov (!%p209_p3), 3   ;;  %s880_s23 = smov (!%p209_p3), 2   ;;  %v881_v3 = vmov (!%p209_p3), 0   ;;  %v882_v4 = vmov (!%p209_p3), 1  }
   0x7   : > { %212 = sbr.rel (%p209_p3) target bundleno = 405 (0x195), region = 32  ;;  %838 = vset.pattern.permute.xlu1 (!%p209_p3), %v878_v0  ;;  %840 = vset.pattern.permute.xlu0 (!%p209_p3), %v879_v1  ;;  %s883_s24 = smov (!%p209_p3), 127   ;;  %v311_v13 = vld [vmem:[%s992_s2] sm:$0xff] (!%p209_p3)  ;;  %v324_v19 = vlaneseq (!%p209_p3) }
   0x8   : > { %v312_v14 = vmul.f32 (!%p209_p3), 0.5, %v311_v13  ;;  %v801_v16 = vrot.slane (!%p209_p3), %v311_v13, 10 }
   0x9   : > { %v325_v23 = vshrl.u32 (!%p209_p3), %v324_v19, 7 }
   0xa   : > { %v314_v18 = vrot.slane (!%p209_p3), %v312_v14, 6 }
   0xb   : > { %v939_v27 = vsub.s32 (!%p209_p3), 0, %v325_v23  ;;  %v941_v29 = vsub.s32 (!%p209_p3), 4, %v325_v23  ;;  %v379_v33 = vsub.s32 (!%p209_p3), 1, %v325_v23  ;;  %v383_v37 = vsub.s32 (!%p209_p3), 5, %v325_v23 }
   0xc   : > { %v315_v22 = vrot.slane (!%p209_p3), %v314_v18, 4 }
   0xe   : > { %s1000_s15 = smov (!%p260_p4, %s868_s15), 1  ;;  %v318_v26 = vadd.f32 %v315_v22, %v311_v13  ;;  %v317_v31 = vsub.f32 %v311_v13, %v315_v22 }
   0xf   : > { %s793_s19 = sshll.u32 %s1000_s15, 2  ;;  %s930_s25 = sshll.u32 %s1000_s15, 3 }
  0x10   : > { %s263_s22 = scalar_lea.vmem %s990_s0, %s793_s19  ;;  %s272_s28 = scalar_lea.vmem %s991_s1, %s930_s25  ;;  %v327_v32 = vrot.slane %v318_v26, %v939_v27  ;;  %v331_v35 = vrot.slane %v318_v26, %v941_v29  ;;  %v352_v38 = vrot.slane %v317_v31, %v939_v27  ;;  %v356_v39 = vrot.slane %v317_v31, %v941_v29 }
  0x11   : > { %v300_v2 = vld [vmem:[%s263_s22] sm:$0xf]  ;;  %v404_v43 = vrot.slane %v317_v31, %v379_v33  ;;  %v408_v48 = vrot.slane %v317_v31, %v383_v37  ;;  %v380_v51 = vrot.slane %v318_v26, %v379_v33  ;;  %v384_v52 = vrot.slane %v318_v26, %v383_v37  ;;  %s298_s7 = scalar_lea.vmem %s994_s4, %s930_s25  ;;  %s288_s10 = scalar_lea.vmem %s993_s3, %s930_s25 }
  0x12   : > { %302 = vrot.lane.b32.xlu0 %v300_v2, %s880_s23  ;;  %320 = vperm.xlu1 %838, %v300_v2   ;;  %v472_v9 = vld [vmem:[%s272_s28] sm:$0xff]  ;;  %v337_v40 = vrot.slane %v327_v32, %v939_v27  ;;  %v341_v44 = vrot.slane %v331_v35, %v939_v27  ;;  %v427_v55 = vsub.f32 %v318_v26, %v317_v31 }
  0x13   : > { %v480_v10 = vmul.f32 0.2, %v472_v9  ;;  %v473_v17 = vmul.f32 0.1, %v472_v9  ;;  %v362_v59 = vrot.slane %v352_v38, %v939_v27  ;;  %v366_v60 = vrot.slane %v356_v39, %v939_v27 }
  0x14   : > { %v414_v63 = vrot.slane %v404_v43, %v379_v33 }
  0x15   : > { %v481_v11 = vmul.f32 1.442695, %v480_v10  ;;  %v478_v21 = vmul.f32 %v801_v16, %v473_v17 }
  0x16   : > { %839 = vset.pattern.permute.xlu1 %v881_v3  ;;  %v390_v3 = vrot.slane %v380_v51, %v379_v33 }
  0x17   : > { %345 = vperm.xlu1 %839, %v300_v2   ;;  %844 = vpow2.f32 %v481_v11  ;;  %v479_v25 = vadd.f32 %v478_v21, %v311_v13 }
  0x1b   : > { %841 = vset.pattern.permute.xlu1 %v882_v4  ;;  %v394_v4 = vrot.slane %v384_v52, %v379_v33 }
  0x1c   : > { %398 = vperm.xlu1 %841, %v300_v2  }
  0x20   : > { %842 = vset.pattern.permute.xlu1 %v878_v0 }
  0x21   : > { %v845_v12 = vpop.eup %844 }
  0x22   : > { %v483_v15 = vmul.f32 %v845_v12, %v311_v13 }
  0x24   : > { %v484_v20 = vmul.f32 0.5, %v483_v15 }
  0x26   : > { %v486_v24 = vrot.slane %v484_v20, 6 }
  0x28   : > { %v487_v28 = vrot.slane %v486_v24, 4 }
  0x2a   : > { %v490_v34 = vadd.f32 %v487_v28, %v479_v25  ;;  %v489_v36 = vsub.f32 %v479_v25, %v487_v28 }
  0x2c   : > { %v495_v41 = vrot.slane %v490_v34, %v939_v27  ;;  %v499_v42 = vrot.slane %v490_v34, %v941_v29  ;;  %v516_v45 = vrot.slane %v489_v36, %v939_v27  ;;  %v520_v46 = vrot.slane %v489_v36, %v941_v29 }
  0x2d   : > { %v560_v49 = vrot.slane %v489_v36, %v379_v33  ;;  %v564_v50 = vrot.slane %v489_v36, %v383_v37  ;;  %v540_v53 = vrot.slane %v490_v34, %v379_v33  ;;  %v544_v54 = vrot.slane %v490_v34, %v383_v37 }
  0x2e   : > { %v583_v56 = vsub.f32 %v490_v34, %v489_v36  ;;  %v505_v57 = vrot.slane %v495_v41, %v939_v27  ;;  %v509_v58 = vrot.slane %v499_v42, %v939_v27  ;;  %v526_v61 = vrot.slane %v516_v45, %v939_v27 }
  0x2f   : > { %v530_v62 = vrot.slane %v520_v46, %v939_v27  ;;  %v570_v1 = vrot.slane %v560_v49, %v379_v33 }
  0x30   : > { %v802_v9 = vrot.slane %v583_v56, 9 }
  0x32   : > { %v588_v31 = vmul.f32 %v802_v9, %v583_v56 }
  0x34   : > { %v593_v41 = vrot.slane %v588_v31, %v939_v27  ;;  %v597_v42 = vrot.slane %v588_v31, %v941_v29 }
  0x84   : > { %v303_v5 = vpop.permute.xlu0 %302 }
  0x85   : > { %v305_v6 = vsub.f32 %v300_v2, %v303_v5 }
  0x87   : > { %307 = vrot.lane.b32.xlu0 %v305_v6, %s883_s24 }
  0x8b   : > { %374 = vperm.xlu0 %840, %v300_v2   ;;  %v574_v2 = vrot.slane %v564_v50, %v379_v33 }
  0x8f   : > { %843 = vset.pattern.permute.xlu0 %v878_v0  ;;  %v418_v0 = vrot.slane %v408_v48, %v379_v33 }
  0x91   : > { %v943_v30 = vpop.permute.xlu1 %320 }
  0x92   : > { %v342_v10 = vmin.f32 %v943_v30, %v337_v40  ;;  %v343_v11 = vmin.f32 %v943_v30, %v341_v44  ;;  %v510_v12 = vmin.f32 %v943_v30, %v505_v57  ;;  %v511_v13 = vmin.f32 %v943_v30, %v509_v58 }
  0x96   : > { %v346_v47 = vpop.permute.xlu1 %345 }
  0x97   : > { %v367_v15 = vmax.f32 %v346_v47, %v362_v59  ;;  %v368_v16 = vmax.f32 %v346_v47, %v366_v60  ;;  %v531_v17 = vmax.f32 %v346_v47, %v526_v61  ;;  %v532_v18 = vmax.f32 %v346_v47, %v530_v62 }
  0x99   : > { %v369_v32 = vsub.f32 %v342_v10, %v367_v15  ;;  %v533_v34 = vsub.f32 %v510_v12, %v531_v17  ;;  %v534_v35 = vsub.f32 %v511_v13, %v532_v18 }
  0x9b   : > { %v399_v5 = vpop.permute.xlu1 %398  ;;  %v371_v43 = vmax.f32 %v369_v32, 0.0  ;;  %v535_v45 = vmax.f32 %v533_v34, 0.0  ;;  %v536_v46 = vmax.f32 %v534_v35, 0.0 }
  0x9c   : > { %v419_v19 = vmax.f32 %v399_v5, %v414_v63  ;;  %v420_v20 = vmax.f32 %v399_v5, %v418_v0  ;;  %v575_v21 = vmax.f32 %v399_v5, %v570_v1  ;;  %v576_v22 = vmax.f32 %v399_v5, %v574_v2 }
  0xf9   : > { %v308_v7 = vpop.permute.xlu0 %307 }
  0xfa   : > { %v310_v8 = vmul.f32 %v308_v7, %v305_v6  ;;  %v550_v6 = vrot.slane %v540_v53, %v379_v33  ;;  %v554_v7 = vrot.slane %v544_v54, %v379_v33  ;;  %v370_v33 = vsub.f32 %v343_v11, %v368_v16 }
  0xfb   : > { %v603_v53 = vrot.slane %v593_v41, %v939_v27  ;;  %v607_v54 = vrot.slane %v597_v42, %v939_v27 }
  0xfc   : > { %435 = vperm.xlu1 %842, %v310_v8   ;;  %v800_v8 = vrot.slane %v427_v55, 9  ;;  %v372_v44 = vmax.f32 %v370_v33, 0.0 }
  0xfe   : > { %v432_v28 = vmul.f32 %v800_v8, %v427_v55 }
 0x100   : > { %v442_v39 = vrot.slane %v432_v28, %v939_v27  ;;  %v446_v40 = vrot.slane %v432_v28, %v941_v29 }
 0x102   : > { %v452_v51 = vrot.slane %v442_v39, %v939_v27  ;;  %v456_v52 = vrot.slane %v446_v40, %v939_v27 }
 0x10a   : > { %v375_v14 = vpop.permute.xlu0 %374 }
 0x10b   : > { %v395_v23 = vmin.f32 %v375_v14, %v390_v3  ;;  %v396_v24 = vmin.f32 %v375_v14, %v394_v4  ;;  %v555_v25 = vmin.f32 %v375_v14, %v550_v6  ;;  %v556_v26 = vmin.f32 %v375_v14, %v554_v7 }
 0x10d   : > { %v421_v30 = vsub.f32 %v395_v23, %v419_v19  ;;  %v422_v36 = vsub.f32 %v396_v24, %v420_v20  ;;  %v577_v37 = vsub.f32 %v555_v25, %v575_v21  ;;  %v578_v38 = vsub.f32 %v556_v26, %v576_v22 }
 0x10f   : > { %v423_v47 = vmax.f32 %v421_v30, 0.0  ;;  %v424_v48 = vmax.f32 %v422_v36, 0.0  ;;  %v579_v49 = vmax.f32 %v577_v37, 0.0  ;;  %v580_v50 = vmax.f32 %v578_v38, 0.0 }
 0x111   : > { %v425_v56 = vmul.f32 %v423_v47, %v371_v43  ;;  %v426_v57 = vmul.f32 %v424_v48, %v372_v44  ;;  %v581_v29 = vmul.f32 %v579_v49, %v535_v45  ;;  %v582_v58 = vmul.f32 %v580_v50, %v536_v46 }
 0x17b   : > { %v436_v55 = vpop.permute.xlu1 %435 }
 0x17c   : > { %v457_v59 = vadd.f32 %v452_v51, %v436_v55  ;;  %v458_v60 = vadd.f32 %v456_v52, %v436_v55  ;;  %v608_v61 = vadd.f32 %v603_v53, %v436_v55  ;;  %v609_v62 = vadd.f32 %v607_v54, %v436_v55 }
 0x17e   : > { %v459_v63 = vsub.f32 %v457_v59, %v425_v56  ;;  %v460_v0 = vsub.f32 %v458_v60, %v426_v57  ;;  %v610_v1 = vsub.f32 %v608_v61, %v581_v29  ;;  %v611_v2 = vsub.f32 %v609_v62, %v582_v58 }
 0x180   : > { %v461_v3 = vmax.f32 %v459_v63, 1e-12  ;;  %v462_v4 = vmax.f32 %v460_v0, 1e-12  ;;  %v612_v5 = vmax.f32 %v610_v1, 1e-12 }
 0x181   : > { %v613_v6 = vmax.f32 %v611_v2, 1e-12 }
 0x182   : > { %846 = vrcp.f32 %v461_v3 }
 0x183   : > { %848 = vrcp.f32 %v462_v4 }
 0x184   : > { %850 = vrcp.f32 %v612_v5 }
 0x185   : > { %852 = vrcp.f32 %v613_v6 }
 0x18c   : > { %v847_v27 = vpop.eup %846 }
 0x18d   : > { %v849_v7 = vpop.eup %848  ;;  %v465_v8 = vmul.f32 %v847_v27, %v425_v56 }
 0x18e   : > { %v851_v9 = vpop.eup %850  ;;  %v466_v10 = vmul.f32 %v849_v7, %v426_v57 }
 0x18f   : > { %v853_v11 = vpop.eup %852  ;;  %v616_v12 = vmul.f32 %v851_v9, %v581_v29 }
 0x190   : > { %v469_v13 = vcombine.low %v465_v8, %v466_v10  ;;  %v617_v14 = vmul.f32 %v853_v11, %v582_v58 }
 0x192   : > { %471 = vst [vmem:[%s298_s7] sm:$0xff] %v469_v13  ;;  %v620_v15 = vcombine.low %v616_v12, %v617_v14 }
 0x194   : > { %622 = vst [vmem:[%s288_s10] sm:$0xff] %v620_v15 }
 0x195 PF: > { %s15_s17 = sadd.s32 1, %s876_s17   ;;  %s995_s15 = smov %s872_s16 }
 0x196   : > { %p12_p5 = scmp.ge.s32.totalorder %s15_s17, 4   ;;  %s996_s16 = smov %s998_s18 }
 0x198   :  { %14 = sbr.rel (!%p12_p5) target bundleno = 2 (0x2), region = 80 }

// kernel: free_loss_forward.5
= control target key start
LH: loop header
LB: loop body
LE: loop exit
PB: predicated region body
PF: predicated region fallthrough
CT: control target
= control target key end

     0   :  { %s247_s0 = inlined_call_operand.vmem [shape: f32[8,512], index: 0, kind: input, shape index: {}]   ;;  %s248_s1 = inlined_call_operand.vmem [shape: f32[8,512], index: 1, kind: input, shape index: {}]   ;;  %s249_s2 = inlined_call_operand.vmem [shape: f32[1,512], index: 2, kind: output, shape index: {}]  }
   0x1   :  { %v11_v0 = vld [vmem:[%s247_s0] sm:$0xff]  ;;  %v12_v1 = vld [vmem:[%s247_s0 + $0x8] sm:$0xff]  ;;  %v13_v2 = vld [vmem:[%s247_s0 + $0x10] sm:$0xff] }
   0x2   :  { %v14_v3 = vld [vmem:[%s247_s0 + $0x18] sm:$0xff]  ;;  %v169_v4 = vmul.f32 -1.442695, %v11_v0  ;;  %v170_v5 = vmul.f32 -1.442695, %v12_v1  ;;  %v39_v16 = vld [vmem:[%s248_s1] sm:$0xff] }
   0x3   :  { %v171_v6 = vmul.f32 -1.442695, %v13_v2  ;;  %v172_v7 = vmul.f32 -1.442695, %v14_v3  ;;  %v40_v17 = vld [vmem:[%s248_s1 + $0x8] sm:$0xff]  ;;  %v41_v18 = vld [vmem:[%s248_s1 + $0x10] sm:$0xff] }
   0x4   :  { %174 = vpow2.f32 %v169_v4  ;;  %v42_v19 = vld [vmem:[%s248_s1 + $0x18] sm:$0xff]  ;;  %v43_v20 = vsub.f32 1.0, %v39_v16  ;;  %v44_v21 = vsub.f32 1.0, %v40_v17  ;;  %v45_v22 = vsub.f32 1.0, %v41_v18 }
   0x5   :  { %176 = vpow2.f32 %v170_v5  ;;  %v46_v24 = vsub.f32 1.0, %v42_v19 }
   0x6   :  { %178 = vpow2.f32 %v171_v6 }
   0x7   :  { %180 = vpow2.f32 %v172_v7 }
   0xe   :  { %v175_v8 = vpop.eup %174 }
   0xf   :  { %v177_v9 = vpop.eup %176  ;;  %v27_v10 = vadd.f32 1.0, %v175_v8 }
  0x10   :  { %v179_v11 = vpop.eup %178  ;;  %v28_v12 = vadd.f32 1.0, %v177_v9 }
  0x11   :  { %v181_v13 = vpop.eup %180  ;;  %v29_v14 = vadd.f32 1.0, %v179_v11  ;;  %182 = vrcp.f32 %v27_v10 }
  0x12   :  { %v30_v15 = vadd.f32 1.0, %v181_v13  ;;  %184 = vrcp.f32 %v28_v12 }
  0x13   :  { %186 = vrcp.f32 %v29_v14 }
  0x14   :  { %188 = vrcp.f32 %v30_v15 }
  0x1b   :  { %v183_v23 = vpop.eup %182 }
  0x1c   :  { %v185_v25 = vpop.eup %184  ;;  %v47_v26 = vmul.f32 %v183_v23, %v43_v20 }
  0x1d   :  { %v187_v27 = vpop.eup %186  ;;  %v48_v28 = vmul.f32 %v185_v25, %v44_v21 }
  0x1e   :  { %v189_v29 = vpop.eup %188  ;;  %v49_v30 = vmul.f32 %v187_v27, %v45_v22  ;;  %v51_v31 = vsub.f32 0.0, %v47_v26  ;;  %v99_v3 = vmul.f32 %v47_v26, %v47_v26  ;;  %v198_v26 = vmov 1966171168  }
  0x1f   :  { %v50_v32 = vmul.f32 %v189_v29, %v46_v24  ;;  %v52_v33 = vsub.f32 0.0, %v48_v28  ;;  %v100_v7 = vmul.f32 %v48_v28, %v48_v28  ;;  %v138_v27 = vunpack.c.l.s4 %v198_v26 }
  0x20   :  { %v53_v34 = vsub.f32 0.0, %v49_v30  ;;  %v55_v35 = vadd.f32 1.0, %v51_v31  ;;  %v58_v39 = vmul.f32 -0.5, %v51_v31  ;;  %v61_v45 = vand.u32 2147483647, %v51_v31 }
  0x21   :  { %v54_v36 = vsub.f32 0.0, %v50_v32  ;;  %v64_v37 = vadd.f32 1.0, %v52_v33  ;;  %v67_v40 = vmul.f32 -0.5, %v52_v33  ;;  %v70_v47 = vand.u32 2147483647, %v52_v33 }
  0x22   :  { %190 = vlog2.f32 %v55_v35  ;;  %v73_v38 = vadd.f32 1.0, %v53_v34  ;;  %v76_v42 = vmul.f32 -0.5, %v53_v34  ;;  %v59_v43 = vadd.f32 1.0, %v58_v39 }
  0x23   :  { %192 = vlog2.f32 %v64_v37  ;;  %v82_v41 = vadd.f32 1.0, %v54_v36  ;;  %v85_v44 = vmul.f32 -0.5, %v54_v36  ;;  %v68_v46 = vadd.f32 1.0, %v67_v40 }
  0x24   :  { %194 = vlog2.f32 %v73_v38  ;;  %v77_v48 = vadd.f32 1.0, %v76_v42  ;;  %v79_v49 = vand.u32 2147483647, %v53_v34  ;;  %v60_v50 = vmul.f32 %v59_v43, %v51_v31 }
  0x25   :  { %196 = vlog2.f32 %v82_v41  ;;  %v86_v51 = vadd.f32 1.0, %v85_v44  ;;  %vm238_vm0 = vcmp.lt.f32.partialorder %v61_v45, 0.0004427343  ;;  %v69_v54 = vmul.f32 %v68_v46, %v52_v33 }
  0x26   :  { %v88_v55 = vand.u32 2147483647, %v54_v36  ;;  %vm71_vm1 = vcmp.lt.f32.partialorder %v70_v47, 0.0004427343  ;;  %v78_v58 = vmul.f32 %v77_v48, %v53_v34  ;;  %vm80_vm2 = vcmp.lt.f32.partialorder %v79_v49, 0.0004427343 }
  0x27   :  { %v87_v63 = vmul.f32 %v86_v51, %v54_v36  ;;  %v101_v10 = vmul.f32 %v49_v30, %v49_v30  ;;  %v102_v15 = vmul.f32 %v50_v32, %v50_v32  ;;  %v140_v31 = vlaneseq }
  0x28   :  { %vm89_vm3 = vcmp.lt.f32.partialorder %v88_v55, 0.0004427343  ;;  %v139_v37 = vunpack.c.0.s8 %v138_v27 }
  0x29   :  { %v141_v41 = vshrl.u32 %v140_v31, 7  ;;  %vm162_vm4 = vcmp.lt.s32.totalorder %v140_v31, 512 }
  0x2b   :  { %v142_v49 = vsub.s32 %v139_v37, %v141_v41 }
  0x2c   :  { %v191_v52 = vpop.eup %190 }
  0x2d   :  { %v193_v56 = vpop.eup %192  ;;  %v57_v57 = vmul.f32 0.6931472, %v191_v52 }
  0x2e   :  { %v195_v59 = vpop.eup %194  ;;  %v66_v60 = vmul.f32 0.6931472, %v193_v56 }
  0x2f   :  { %v63_v61 = vsel %vm238_vm0, %v60_v50, %v57_v57  ;;  %v75_v62 = vmul.f32 0.6931472, %v195_v59  ;;  %v197_v0 = vpop.eup %196 }
  0x30   :  { %v72_v1 = vsel %vm71_vm1, %v69_v54, %v66_v60  ;;  %v91_v2 = vmax.f32 %v63_v61, -100.0  ;;  %v84_v5 = vmul.f32 0.6931472, %v197_v0 }
  0x31   :  { %v81_v4 = vsel %vm80_vm2, %v78_v58, %v75_v62  ;;  %v92_v6 = vmax.f32 %v72_v1, -100.0 }
  0x32   :  { %v93_v8 = vmax.f32 %v81_v4, -100.0  ;;  %v95_v9 = vsub.f32 0.0, %v91_v2  ;;  %v90_v11 = vsel %vm89_vm3, %v87_v63, %v84_v5 }
  0x33   :  { %v96_v12 = vsub.f32 0.0, %v92_v6  ;;  %v94_v13 = vmax.f32 %v90_v11, -100.0 }
  0x34   :  { %v97_v14 = vsub.f32 0.0, %v93_v8  ;;  %v103_v16 = vmul.f32 %v99_v3, %v95_v9 }
  0x35   :  { %v104_v17 = vmul.f32 %v100_v7, %v96_v12  ;;  %v98_v18 = vsub.f32 0.0, %v94_v13 }
  0x36   :  { %v105_v19 = vmul.f32 %v101_v10, %v97_v14  ;;  %v107_v20 = vrot.slane %v103_v16, 4 }
  0x37   :  { %v113_v21 = vrot.slane %v104_v17, 4  ;;  %v106_v22 = vmul.f32 %v102_v15, %v98_v18 }
  0x38   :  { %v108_v23 = vadd.f32 %v107_v20, %v103_v16  ;;  %v119_v24 = vrot.slane %v105_v19, 4 }
  0x39   :  { %v114_v25 = vadd.f32 %v113_v21, %v104_v17  ;;  %v125_v30 = vrot.slane %v106_v22, 4 }
  0x3a   :  { %v109_v28 = vrot.slane %v108_v23, 2  ;;  %v120_v29 = vadd.f32 %v119_v24, %v105_v19 }
  0x3b   :  { %v115_v33 = vrot.slane %v114_v25, 2  ;;  %v126_v32 = vadd.f32 %v125_v30, %v106_v22 }
  0x3c   :  { %v110_v34 = vadd.f32 %v109_v28, %v108_v23  ;;  %v121_v35 = vrot.slane %v120_v29, 2 }
  0x3d   :  { %v116_v36 = vadd.f32 %v115_v33, %v114_v25  ;;  %v127_v40 = vrot.slane %v126_v32, 2 }
  0x3e   :  { %v111_v38 = vrot.slane %v110_v34, 1  ;;  %v122_v39 = vadd.f32 %v121_v35, %v120_v29 }
  0x3f   :  { %v117_v42 = vrot.slane %v116_v36, 1  ;;  %v128_v45 = vadd.f32 %v127_v40, %v126_v32 }
  0x40   :  { %v112_v43 = vadd.f32 %v111_v38, %v110_v34  ;;  %v123_v44 = vrot.slane %v122_v39, 1 }
  0x41   :  { %v118_v46 = vadd.f32 %v117_v42, %v116_v36  ;;  %v129_v48 = vrot.slane %v128_v45, 1 }
  0x42   :  { %v124_v47 = vadd.f32 %v123_v44, %v122_v39 }
  0x43   :  { %v135_v50 = vcombine.low %v112_v43, %v118_v46  ;;  %v130_v51 = vadd.f32 %v129_v48, %v128_v45 }
  0x45   :  { %v136_v52 = vcombine.low %v124_v47, %v130_v51  ;;  %v143_v53 = vrot.slane %v135_v50, %v142_v49 }
  0x47   :  { %v150_v54 = vrot.slane %v136_v52, %v142_v49 }
  0x49   :  { %v151_v55 = vcombine.low %v143_v53, %v150_v54 }
  0x4b   :  { %v158_v56 = vrot.slane %v151_v55, %v142_v49 }
  0x4d   :  { %164 = vst.msk [vmem:[%s249_s2] sm:$0xf] %vm162_vm4, %v158_v56 }

// kernel: free_loss_forward.4
= control target key start
LH: loop header
LB: loop body
LE: loop exit
PB: predicated region body
PF: predicated region fallthrough
CT: control target
= control target key end

     0   :  { %s419_s12 = smov 0   ;;  %s476_s0 = inlined_call_operand.vmem [shape: f32[2,4,128], index: 0, kind: input, shape index: {}]   ;;  %s477_s1 = inlined_call_operand.vmem [shape: f32[2,4,4,128], index: 1, kind: input, shape index: {}]   ;;  %s478_s2 = inlined_call_operand.vmem [shape: f32[2,4,4,128], index: 2, kind: input, shape index: {}]   ;;  %s479_s3 = inlined_call_operand.vmem [shape: f32[2,4,1], index: 3, kind: output, shape index: {}]  }
   0x1 LB: > { %s356_s13 = sadd.s32 4294967295, %s397_s12   ;;  %p360_p0 = scmp.ge.s32.totalorder %s397_s12, 1  ;;  %s397_s12 = sphi %s419_s12, %s13_s12  }
   0x2   : > { %p156_p1 = scmp.lt.s32.totalorder %s397_s12, 3 }
   0x4   : > { %p157_p2 = pnand %p360_p0, %p156_p1 }
   0x5   : > { %p188_p3 = scmp.lt.s32.totalorder (!%p157_p2), %s356_s13, 1  ;;  %vm242_vm0 = vcmask (!%p157_p2), 1043456   ;;  %v256_v51 = vlaneseq (!%p157_p2)  ;;  %vm277_vm6 = vcmask (!%p157_p2), 3072  }
   0x6   : > { %160 = sbr.rel (%p157_p2) target bundleno = 388 (0x184), region = 32 }
   0x7   : > { %v257_v52 = vand.u32 (!%p157_p2), 127, %v256_v51 }
   0x9   : > { %vm258_vm5 = vcmp.lt.s32.totalorder (!%p157_p2), %v257_v52, 50 }
   0xd   : > { %s489_s13 = smov (!%p188_p3, %s356_s13), 1 }
   0xe   : > { %s373_s14 = sshll.u32 %s489_s13, 4  ;;  %s361_s21 = sshll.u32 %s489_s13, 2 }
   0xf   : > { %s196_s17 = scalar_lea.vmem %s477_s1, %s373_s14  ;;  %s201_s20 = scalar_lea.vmem %s478_s2, %s373_s14 }
  0x10   : > { %v210_v0 = vld [vmem:[%s196_s17] sm:$0xf]  ;;  %v211_v1 = vld [vmem:[%s196_s17 + $0x4] sm:$0xf]  ;;  %v212_v2 = vld [vmem:[%s196_s17 + $0x8] sm:$0xf]  ;;  %s191_s24 = scalar_lea.vmem %s476_s0, %s361_s21  ;;  %s205_s27 = scalar_lea.vmem %s479_s3, %s361_s21 }
  0x11   : > { %v206_v3 = vld [vmem:[%s201_s20] sm:$0xf]  ;;  %v207_v4 = vld [vmem:[%s201_s20 + $0x4] sm:$0xf]  ;;  %v208_v5 = vld [vmem:[%s201_s20 + $0x8] sm:$0xf] }
  0x12   : > { %v209_v6 = vld [vmem:[%s201_s20 + $0xc] sm:$0xf]  ;;  %v214_v8 = vsub.f32 %v206_v3, %v210_v0  ;;  %v215_v9 = vsub.f32 %v207_v4, %v211_v1  ;;  %v216_v10 = vsub.f32 %v208_v5, %v212_v2  ;;  %v251_v46 = vld [vmem:[%s191_s24] sm:$0xf] }
  0x13   : > { %v213_v7 = vld [vmem:[%s196_s17 + $0xc] sm:$0xf] }
  0x14   : > { %v217_v11 = vsub.f32 %v209_v6, %v213_v7  ;;  %v218_v12 = vand.u32 2147483647, %v214_v8  ;;  %v219_v13 = vand.u32 2147483647, %v215_v9  ;;  %v220_v14 = vand.u32 2147483647, %v216_v10 }
  0x15   : > { %v226_v16 = vmul.f32 4.5454545, %v214_v8  ;;  %v227_v17 = vmul.f32 4.5454545, %v215_v9  ;;  %v228_v22 = vmul.f32 4.5454545, %v216_v10 }
  0x16   : > { %v221_v15 = vand.u32 2147483647, %v217_v11  ;;  %vm436_vm1 = vcmp.lt.f32.partialorder %v218_v12, 0.11  ;;  %vm440_vm2 = vcmp.lt.f32.partialorder %v219_v13, 0.11 }
  0x17   : > { %vm444_vm3 = vcmp.lt.f32.partialorder %v220_v14, 0.11  ;;  %v229_v23 = vmul.f32 4.5454545, %v217_v11  ;;  %v230_v24 = vmul.f32 %v226_v16, %v214_v8  ;;  %v231_v25 = vmul.f32 %v227_v17, %v215_v9 }
  0x18   : > { %vm448_vm4 = vcmp.lt.f32.partialorder %v221_v15, 0.11  ;;  %v367_v26 = vadd.f32 -0.055, %v218_v12  ;;  %v368_v27 = vadd.f32 -0.055, %v219_v13  ;;  %v232_v29 = vmul.f32 %v228_v22, %v216_v10 }
  0x19   : > { %v369_v28 = vadd.f32 -0.055, %v220_v14  ;;  %v233_v30 = vmul.f32 %v229_v23, %v217_v11  ;;  %v370_v31 = vadd.f32 -0.055, %v221_v15 }
  0x1a   : > { %v238_v32 = vsel %vm436_vm1, %v230_v24, %v367_v26  ;;  %v239_v33 = vsel %vm440_vm2, %v231_v25, %v368_v27 }
  0x1b   : > { %v240_v34 = vsel %vm444_vm3, %v232_v29, %v369_v28  ;;  %v241_v35 = vsel %vm448_vm4, %v233_v30, %v370_v31  ;;  %v243_v36 = vsel %vm242_vm0, %v238_v32, 0.0  ;;  %v244_v37 = vsel %vm242_vm0, %v239_v33, 0.0 }
  0x1c   : > { %v245_v38 = vadd.f32 %v244_v37, %v243_v36  ;;  %v246_v39 = vsel %vm242_vm0, %v240_v34, 0.0  ;;  %v248_v40 = vsel %vm242_vm0, %v241_v35, 0.0 }
  0x1e   : > { %v247_v41 = vadd.f32 %v246_v39, %v245_v38 }
  0x20   : > { %v249_v42 = vadd.f32 %v248_v40, %v247_v41 }
  0x22   : > { %v250_v43 = vmul.f32 0.75, %v249_v42 }
  0x24   : > { %v252_v44 = vsub.f32 0.0, %v250_v43 }
  0x26   : > { %v253_v45 = vmul.f32 1.442695, %v252_v44 }
  0x28   : > { %383 = vpow2.f32 %v253_v45 }
  0x32   : > { %v384_v47 = vpop.eup %383 }
  0x33   : > { %v255_v48 = vmul.f32 %v384_v47, %v251_v46 }
  0x35   : > { %v259_v49 = vsub.f32 1.0, %v255_v48 }
  0x37   : > { %v260_v50 = vmax.f32 %v259_v49, 1e-12 }
  0x39   : > { %385 = vrcp.f32 %v260_v50 }
  0x43   : > { %v386_v53 = vpop.eup %385 }
  0x44   : > { %v263_v54 = vsel %vm258_vm5, %v386_v53, 0.0 }
  0x45   : > { %v264_v55 = vsel %vm242_vm0, %v263_v54, 0.0 }
  0x46   : > { %265 = vadd.xlane.f32.xlu0 %v264_v55 }
  0xd3   : > { %v266_v56 = vpop.xlane.xlu0 %265 }
  0xd4   : > { %387 = vrcp.f32 %v266_v56 }
  0xde   : > { %v388_v57 = vpop.eup %387 }
  0xdf   : > { %v268_v58 = vmul.f32 %v388_v57, %v263_v54 }
  0xe1   : > { %v269_v59 = vmul.f32 %v268_v58, %v255_v48 }
  0xe3   : > { %v270_v60 = vsel %vm242_vm0, %v269_v59, 0.0 }
  0xe4   : > { %271 = vadd.xlane.f32.xlu0 %v270_v60 }
 0x171   : > { %v272_v61 = vpop.xlane.xlu0 %271 }
 0x172   : > { %389 = vlog2.f32 %v272_v61 }
 0x17c   : > { %v390_v62 = vpop.eup %389 }
 0x17d   : > { %v274_v63 = vmul.f32 0.6931472, %v390_v62 }
 0x17f   : > { %v275_v0 = vmax.f32 %v274_v63, -100.0 }
 0x181   : > { %v276_v1 = vsub.f32 0.0, %v275_v0 }
 0x183   : > { %278 = vst.msk [vmem:[%s205_s27] sm:$0xf] %vm277_vm6, %v276_v1 }
 0x184 PF: > { %s13_s12 = sadd.s32 1, %s397_s12  }
 0x185   : > { %p10_p4 = scmp.ge.s32.totalorder %s13_s12, 4  }
 0x187   :  { %12 = sbr.rel (!%p10_p4) target bundleno = 1 (0x1), region = 68 }

</bundles_post_ra>
